<compile_context>
chip_gen: v7x
topology: tpu7x:2x2x1
jax: 0.10.0
libtpu: 0.0.40
codegen_flags: <defaults>
</compile_context>

<pallas_src>
import jax
import jax.numpy as jnp
from jax.experimental import pallas as pl
from jax.experimental.pallas import tpu as pltpu


def _round_up(n, m):
    return ((n + m - 1) // m) * m


def _choose_batch_tile(b_pad, tb_max):
    """Pick a sublane-aligned tile that divides b_pad exactly.

    Prefers >= 2 grid tiles (so v7x's two TensorCores both engage) and falls
    back to a padded 512-row tile only if the best exact divisor would be
    degenerate (tiny tiles -> per-grid-step overhead dominates).
    Returns (tile_rows, padded_batch).
    """
    units = b_pad // 8                       # number of 8-row sublane units
    max_units = max(1, min(tb_max // 8, units))

    best = 1
    for d in range(max_units, 0, -1):
        if units % d == 0:
            best = d
            break
    # Prefer at least 2 grid tiles when the batch allows it (v7x megacore).
    if best == units and units >= 2:
        for d in range(units // 2, 0, -1):
            if units % d == 0:
                best = d
                break

    tile = best * 8
    # Degenerate-divisor fallback (e.g. prime-ish batch): pad to a 512-row
    # multiple instead of running thousands of tiny grid steps.
    if tile < 128 and b_pad > 4096:
        tile = 512
        b_pad = _round_up(b_pad, tile)
    return tile, b_pad


def lm_encoder_kernel(x_ref, w1_ref, b1_ref, w2_ref, b2_ref, o_ref):
    # In-kernel bf16 cast of x (free: kernel is DMA-bound, VPU has slack).
    x = x_ref[...].astype(jnp.bfloat16)
    # Layer 1: Linear(16, 256) + ReLU   (bf16 operands, f32 accumulate)
    h = jnp.dot(x, w1_ref[...], preferred_element_type=jnp.float32)
    h = jnp.maximum(h + b1_ref[...], 0.0)          # b1 is (1, 256), broadcasts
    # Layer 2: Linear(256, 512) + ReLU  (dominant MXU work: K=256, N=512)
    y = jnp.dot(h.astype(w2_ref.dtype), w2_ref[...],
                preferred_element_type=jnp.float32)
    y = y + b2_ref[...]                            # b2 is (1, 512)
    o_ref[...] = jnp.maximum(y, 0.0).astype(o_ref.dtype)


def lm_encoder(x, w1, b1, w2, b2, *, tb=1024, out_dtype=jnp.bfloat16):
    """x: (B, 16) float32 -> (B, 512) in out_dtype (bf16 by default).

    Weights w1 (16, 256) / w2 (256, 512) should already be bf16 (cast once at
    init); biases b1 / b2 are f32 and are reshaped to (1, N) rows here.
    """
    B, F = x.shape
    assert F == 16, f"expected 16 input features, got {F}"

    # Weights: bf16 MXU operands.  (Pre-cast at init so this is a no-op.)
    if w1.dtype != jnp.bfloat16:
        w1 = w1.astype(jnp.bfloat16)
    if w2.dtype != jnp.bfloat16:
        w2 = w2.astype(jnp.bfloat16)
    # Biases must be (1, N) 2-D rows to match the BlockSpecs.
    b1 = jnp.reshape(b1, (1, 256)).astype(jnp.float32)
    b2 = jnp.reshape(b2, (1, 512)).astype(jnp.float32)

    # Sublane-align the batch (pad by at most 7 rows); pick a tile that divides
    # the padded batch exactly so no large pad / out[:B] full-copy is needed.
    B_pad = _round_up(B, 8)
    tb_eff, B_pad = _choose_batch_tile(B_pad, tb)
    if B_pad != B:
        # Padded rows compute ReLU(0 @ W + b) = ReLU(b): harmless junk that is
        # sliced off below and never exposed.
        x = jnp.pad(x, ((0, B_pad - B), (0, 0)))

    grid = (B_pad // tb_eff,)
    out_shape = jax.ShapeDtypeStruct((B_pad, 512), out_dtype)

    out = pl.pallas_call(
        lm_encoder_kernel,
        out_shape=out_shape,
        grid_spec=pltpu.PrefetchScalarGridSpec(
            num_scalar_prefetch=0,
            grid=grid,
            in_specs=[
                # Per-tile batch slice of x (f32; cast to bf16 in-kernel).
                pl.BlockSpec((tb_eff, 16), lambda i: (i, 0)),
                # Weights / biases: constant block index -> DMA'd once,
                # VMEM-resident for every batch tile.
                pl.BlockSpec((16, 256), lambda i: (0, 0)),
                pl.BlockSpec((1, 256), lambda i: (0, 0)),
                pl.BlockSpec((256, 512), lambda i: (0, 0)),
                pl.BlockSpec((1, 512), lambda i: (0, 0)),
            ],
            out_specs=pl.BlockSpec((tb_eff, 512), lambda i: (i, 0)),
        ),
        compiler_params=pltpu.CompilerParams(
            dimension_semantics=("parallel",),   # megacore split on v7x
        ),
    )(x, w1, b1, w2, b2)

    if B_pad != B:
        out = out[:B]
    return out


def init_params(key):
    """Deterministic synthetic init (PyTorch-style uniform fan-in bounds).

    Weights are returned in bf16 (cast once here, not per call); biases in f32.
    """
    k1, k2, k3, k4 = jax.random.split(key, 4)
    bound1 = 1.0 / jnp.sqrt(16.0)
    bound2 = 1.0 / jnp.sqrt(256.0)
    w1 = jax.random.uniform(k1, (16, 256), jnp.float32, -bound1, bound1)
    b1 = jax.random.uniform(k2, (1, 256), jnp.float32, -bound1, bound1)
    w2 = jax.random.uniform(k3, (256, 512), jnp.float32, -bound2, bound2)
    b2 = jax.random.uniform(k4, (1, 512), jnp.float32, -bound2, bound2)
    return w1.astype(jnp.bfloat16), b1, w2.astype(jnp.bfloat16), b2


def reference(x, w1, b1, w2, b2):
    # Full-f32 reference of the PyTorch forward.
    h = jnp.maximum(x @ w1.astype(jnp.float32) + b1, 0.0)
    return jnp.maximum(h @ w2.astype(jnp.float32) + b2, 0.0)


if __name__ == "__main__":
    key = jax.random.PRNGKey(0)
    kx, kp = jax.random.split(key)
    batch = 8
    x = jax.random.normal(kx, (batch, 16), jnp.float32)
    w1, b1, w2, b2 = init_params(kp)

    out = lm_encoder(x, w1, b1, w2, b2)
    out = jax.block_until_ready(out)

    ref = reference(x, w1, b1, w2, b2)
    assert out.shape == (batch, 512), out.shape
    assert out.dtype == jnp.bfloat16, out.dtype
    # bf16 matmul operands + bf16 output (f32 accumulate) vs f32 reference.
    assert jnp.allclose(out.astype(jnp.float32), ref, atol=3e-2, rtol=3e-2), \
        "mismatch vs reference"

    print("KERNEL_OK")
</pallas_src>

<mosaic_0001>
module attributes {stable_mosaic.version = 11 : i64} {
  func.func @lm_encoder_kernel(%arg0: i32, %arg1: memref<8x16xf32, #tpu.memory_space<vmem>>, %arg2: memref<16x256xbf16, #tpu.memory_space<vmem>>, %arg3: memref<1x256xf32, #tpu.memory_space<vmem>>, %arg4: memref<256x512xbf16, #tpu.memory_space<vmem>>, %arg5: memref<1x512xf32, #tpu.memory_space<vmem>>, %arg6: memref<8x512xbf16, #tpu.memory_space<vmem>>) attributes {dimension_semantics = [#tpu.dimension_semantics<parallel>], iteration_bounds = array<i64: 1>, scalar_prefetch = 0 : i64, scratch_operands = 0 : i64, tpu.core_type = #tpu.core_type<tc>, window_params = [{transform_indices = @transform_0, window_bounds = array<i64: 8, 16>}, {pipeline_mode = #tpu.pipeline_mode<synchronous>, transform_indices = @transform_1, window_bounds = array<i64: 16, 256>}, {pipeline_mode = #tpu.pipeline_mode<synchronous>, transform_indices = @transform_2, window_bounds = array<i64: 1, 256>}, {pipeline_mode = #tpu.pipeline_mode<synchronous>, transform_indices = @transform_3, window_bounds = array<i64: 256, 512>}, {pipeline_mode = #tpu.pipeline_mode<synchronous>, transform_indices = @transform_4, window_bounds = array<i64: 1, 512>}, {transform_indices = @transform_5, window_bounds = array<i64: 8, 512>}]} {
    %c0 = arith.constant 0 : index
    %c0_0 = arith.constant 0 : index
    %0 = vector.load %arg1[%c0, %c0_0] : memref<8x16xf32, #tpu.memory_space<vmem>>, vector<8x16xf32>
    %1 = arith.truncf %0 : vector<8x16xf32> to vector<8x16xbf16>
    %c0_1 = arith.constant 0 : index
    %c0_2 = arith.constant 0 : index
    %2 = vector.load %arg2[%c0_1, %c0_2] : memref<16x256xbf16, #tpu.memory_space<vmem>>, vector<16x256xbf16>
    %cst = arith.constant dense<0.000000e+00> : vector<8x256xf32>
    %3 = tpu.matmul %1, %2, %cst {dimension_numbers = #tpu.dot_dimension_numbers<[1], [0], [0], [1], [0, 0, 1, 1], [], []>} : vector<8x16xbf16>, vector<16x256xbf16>, vector<8x256xf32> -> vector<8x256xf32>
    %c0_3 = arith.constant 0 : index
    %c0_4 = arith.constant 0 : index
    %4 = vector.load %arg3[%c0_3, %c0_4] : memref<1x256xf32, #tpu.memory_space<vmem>>, vector<1x256xf32>
    %5 = vector.broadcast %4 : vector<1x256xf32> to vector<8x256xf32>
    %6 = arith.addf %3, %5 : vector<8x256xf32>
    %cst_5 = arith.constant 0.000000e+00 : f32
    %7 = vector.broadcast %cst_5 : f32 to vector<8x256xf32>
    %8 = arith.maximumf %6, %7 : vector<8x256xf32>
    %9 = arith.truncf %8 : vector<8x256xf32> to vector<8x256xbf16>
    %c0_6 = arith.constant 0 : index
    %c0_7 = arith.constant 0 : index
    %10 = vector.load %arg4[%c0_6, %c0_7] : memref<256x512xbf16, #tpu.memory_space<vmem>>, vector<256x512xbf16>
    %cst_8 = arith.constant dense<0.000000e+00> : vector<8x512xf32>
    %11 = tpu.matmul %9, %10, %cst_8 {dimension_numbers = #tpu.dot_dimension_numbers<[1], [0], [0], [1], [0, 0, 1, 1], [], []>} : vector<8x256xbf16>, vector<256x512xbf16>, vector<8x512xf32> -> vector<8x512xf32>
    %c0_9 = arith.constant 0 : index
    %c0_10 = arith.constant 0 : index
    %12 = vector.load %arg5[%c0_9, %c0_10] : memref<1x512xf32, #tpu.memory_space<vmem>>, vector<1x512xf32>
    %13 = vector.broadcast %12 : vector<1x512xf32> to vector<8x512xf32>
    %14 = arith.addf %11, %13 : vector<8x512xf32>
    %cst_11 = arith.constant 0.000000e+00 : f32
    %15 = vector.broadcast %cst_11 : f32 to vector<8x512xf32>
    %16 = arith.maximumf %14, %15 : vector<8x512xf32>
    %17 = arith.truncf %16 : vector<8x512xf32> to vector<8x512xbf16>
    %c0_12 = arith.constant 0 : index
    %c0_13 = arith.constant 0 : index
    %18 = vector.load %arg6[%c0_12, %c0_13] : memref<8x512xbf16, #tpu.memory_space<vmem>>, vector<8x512xbf16>
    tpu.vector_store %arg6[%c0_12, %c0_13], %17 {strides = array<i32>} : memref<8x512xbf16, #tpu.memory_space<vmem>>, vector<8x512xbf16>,
    return
  }
  func.func @transform_0(%arg0: i32) -> (i32, i32) {
    %c0_i32 = arith.constant 0 : i32
    %c0_i32_0 = arith.constant 0 : i32
    return %arg0, %c0_i32 : i32, i32
  }
  func.func @transform_1(%arg0: i32) -> (i32, i32) {
    %c0_i32 = arith.constant 0 : i32
    %c0_i32_0 = arith.constant 0 : i32
    %c0_i32_1 = arith.constant 0 : i32
    return %c0_i32, %c0_i32_0 : i32, i32
  }
  func.func @transform_2(%arg0: i32) -> (i32, i32) {
    %c0_i32 = arith.constant 0 : i32
    %c0_i32_0 = arith.constant 0 : i32
    %c0_i32_1 = arith.constant 0 : i32
    return %c0_i32, %c0_i32_0 : i32, i32
  }
  func.func @transform_3(%arg0: i32) -> (i32, i32) {
    %c0_i32 = arith.constant 0 : i32
    %c0_i32_0 = arith.constant 0 : i32
    %c0_i32_1 = arith.constant 0 : i32
    return %c0_i32, %c0_i32_0 : i32, i32
  }
  func.func @transform_4(%arg0: i32) -> (i32, i32) {
    %c0_i32 = arith.constant 0 : i32
    %c0_i32_0 = arith.constant 0 : i32
    %c0_i32_1 = arith.constant 0 : i32
    return %c0_i32, %c0_i32_0 : i32, i32
  }
  func.func @transform_5(%arg0: i32) -> (i32, i32) {
    %c0_i32 = arith.constant 0 : i32
    %c0_i32_0 = arith.constant 0 : i32
    return %arg0, %c0_i32 : i32, i32
  }
}

</mosaic_0001>

<bundles_post_ra>
// kernel: tpu_custom_call.1
= control target key start
LH: loop header
LB: loop body
LE: loop exit
PB: predicated region body
PF: predicated region fallthrough
CT: control target
= control target key end

     0   :  { %10 = vsyncpa [#allocation3], 0  ;;  %s1028_s0 = inlined_call_operand.hbm [shape: f32[8,16], index: 0, kind: input, shape index: {}]   ;;  %s1029_s1 = inlined_call_operand.hbm [shape: bf16[16,256], index: 1, kind: input, shape index: {}]   ;;  %s1030_s2 = inlined_call_operand.vmem [shape: f32[1,256], index: 2, kind: input, shape index: {}]   ;;  %s1031_s3 = inlined_call_operand.hbm [shape: bf16[256,512], index: 3, kind: input, shape index: {}]   ;;  %s1032_s4 = inlined_call_operand.vmem [shape: f32[1,512], index: 4, kind: input, shape index: {}]   ;;  %s1033_s5 = inlined_call_operand.hbm [shape: bf16[8,512], index: 5, kind: output, shape index: {}]  }
   0x1   :  { %11 = vsyncpa [#allocation6], 0 }
   0x2   :  { %12 = vsyncpa [#allocation4], 0  ;;  %s935_s18 = smov [#allocation5]   ;;  %s841_s22 = scalar_lea.hbm %s1029_s1, 256 }
   0x3   :  { %s28_s19 = sshll.u32 %s935_s18, 4  ;;  %p842_p0 = scmp.ne.s32.totalorder %s1029_s1, %s841_s22  ;;  %s29_s19 = int_to_ptr.vmem [resolvable:$true] %s28_s19 }
   0x4   :  { %p845_p1 = scmp.lt.u32.totalorder %s841_s22, %s1029_s1 }
   0x6   :  { %p847_p2 = pnand %p845_p1, %p842_p0 }
   0x8   :  { %850 = shalt.err (!%p847_p2)
}
   0x9   :  { %s851_s27 = scalar_lea.vmem %s29_s19, 256  ;;  %p856_p4 = scmp.lt.s32.totalorder %s29_s19, %s29_s19 }
   0xa   :  { %p852_p3 = scmp.ne.s32.totalorder %s29_s19, %s851_s27  ;;  %p857_p5 = scmp.lt.s32.totalorder %s851_s27, %s851_s27 }
   0xc   :  { %p858_p6 = por %p857_p5, %p856_p4 }
   0xe   :  { %p859_p7 = pnand %p858_p6, %p852_p3 }
  0x10   :  { %862 = shalt.err (!%p859_p7)
}
  0x11   :  { %s936_s28 = smov 128   ;;  %s937_s29 = smov 8  }
  0x12   :  { %34 = dma.hbm_to_vmem [thread:$0]  %s1029_s1, 256, %s29_s19, [#allocation6], %s936_s28, %s936_s28, %s937_s29  }
  0x13   :  { %s938_s7 = smov [#allocation2]   ;;  %s939_s9 = smov [#allocation7]  }
  0x14   :  { %s19_s8 = sshll.u32 %s938_s7, 4  ;;  %s42_s10 = sshll.u32 %s939_s9, 4  ;;  %s20_s8 = int_to_ptr.vmem [resolvable:$true] %s19_s8  ;;  %s43_s10 = int_to_ptr.vmem [resolvable:$true] %s42_s10 }
  0x15   :  { %s863_s13 = scalar_lea.hbm %s1028_s0, 128 }
  0x16   :  { %p864_p8 = scmp.ne.s32.totalorder %s1028_s0, %s863_s13  ;;  %p867_p9 = scmp.lt.u32.totalorder %s863_s13, %s1028_s0 }
  0x18   :  { %p869_p10 = pnand %p867_p9, %p864_p8 }
  0x1a   :  { %872 = shalt.err (!%p869_p10)
}
  0x1b   :  { %s873_s1 = scalar_lea.vmem %s20_s8, 128  ;;  %p878_p12 = scmp.lt.s32.totalorder %s20_s8, %s20_s8 }
  0x1c   :  { %p874_p11 = scmp.ne.s32.totalorder %s20_s8, %s873_s1  ;;  %p879_p13 = scmp.lt.s32.totalorder %s873_s1, %s873_s1 }
  0x1e   :  { %p880_p0 = por %p879_p13, %p878_p12 }
  0x20   :  { %p881_p1 = pnand %p880_p0, %p874_p11 }
  0x22   :  { %884 = shalt.err (!%p881_p1)
}
  0x23   :  { %22 = dma.hbm_to_vmem [thread:$0]  %s1028_s0, 128, %s20_s8, [#allocation3]  }
  0x24   :  { %s885_s22 = scalar_lea.hbm %s1031_s3, 8192 }
  0x25   :  { %p886_p2 = scmp.ne.s32.totalorder %s1031_s3, %s885_s22  ;;  %p889_p3 = scmp.lt.u32.totalorder %s885_s22, %s1031_s3 }
  0x27   :  { %p891_p4 = pnand %p889_p3, %p886_p2 }
  0x29   :  { %894 = shalt.err (!%p891_p4)
}
  0x2a   :  { %s895_s27 = scalar_lea.vmem %s43_s10, 8192  ;;  %p900_p6 = scmp.lt.s32.totalorder %s43_s10, %s43_s10 }
  0x2b   :  { %p896_p5 = scmp.ne.s32.totalorder %s43_s10, %s895_s27  ;;  %p901_p7 = scmp.lt.s32.totalorder %s895_s27, %s895_s27 }
  0x2d   :  { %p902_p8 = por %p901_p7, %p900_p6 }
  0x2f   :  { %p903_p9 = pnand %p902_p8, %p896_p5 }
  0x31   :  { %906 = shalt.err (!%p903_p9)
}
  0x32   :  { %s940_s0 = smov 256   ;;  %s941_s28 = smov 16  }
  0x33   :  { %48 = dma.hbm_to_vmem [thread:$0]  %s1031_s3, 8192, %s43_s10, [#allocation6], %s940_s0, %s940_s0, %s941_s28  }
  0x34   :  { %929 = dma.done.wait [#allocation3], 128  }
  0x35   :  { %930 = vsyncadd [#allocation3], 4294967168 }
  0x36   :  { %931 = dma.done.wait [#allocation6], 8448  }
  0x37   :  { %932 = vsyncadd [#allocation6], 4294958848  ;;  %v942_v0 = vmov 0   ;;  %v742_v1 = vld [vmem:[#allocation5 + $0x4] ss:$8 sps:$4 sm:$0xff]   ;;  %v61_v3 = vld [vmem:[#allocation2] sm:$0xff] }
  0x38   :  { %123 = vmatprep.mubr.bf16.mxu0 %v942_v0  ;;  %v744_v2 = vld [vmem:[#allocation5] ss:$8 sps:$4 sm:$0xff]   ;;  %91 = vmatprep.subr.bf16.mxu0 %v742_v1  ;;  %v62_v4 = vpack.c.bf16 %v61_v3, %v61_v3  ;;  %v745_v5 = vld [vmem:[#allocation7 + $0x4] ss:$16 sps:$4 sm:$0xff]   ;;  %vm87_vm0 = vcmask 130048  }
  0x39   :  { %92 = vmatpush1.bf16.msra.mxu0 %v744_v2  ;;  %v747_v6 = vld [vmem:[#allocation7 + $0x8] ss:$16 sps:$4 sm:$0xff]   ;;  %v749_v7 = vld [vmem:[#allocation7 + $0xc] ss:$16 sps:$4 sm:$0xff]   ;;  %542 = vmatprep.subr.bf16.mxu1 %v745_v5  ;;  %v750_v8 = vld [vmem:[#allocation7] ss:$16 sps:$4 sm:$0xff]   ;;  %v67_v5 = vlaneseq }
  0x3a   :  { %583 = vmatprep.subr.bf16.mxu0 %v749_v7  ;;  %v751_v9 = vld [vmem:[#allocation7 + $0x24] ss:$16 sps:$4 sm:$0xff]   ;;  %543 = vmatpush1.bf16.msra.mxu1 %v750_v8  ;;  %v753_v10 = vld [vmem:[#allocation7 + $0x28] ss:$16 sps:$4 sm:$0xff]   ;;  %v755_v11 = vld [vmem:[#allocation7 + $0x2c] ss:$16 sps:$4 sm:$0xff]  }
  0x3b   :  { %v756_v12 = vld [vmem:[#allocation7 + $0x20] ss:$16 sps:$4 sm:$0xff]   ;;  %544 = vmatprep.subr.bf16.mxu1 %v751_v9  ;;  %v757_v13 = vld [vmem:[#allocation7 + $0x44] ss:$16 sps:$4 sm:$0xff]   ;;  %v761_v14 = vld [vmem:[#allocation7 + $0x4c] ss:$16 sps:$4 sm:$0xff]  }
  0x3c   :  { %664 = vmatmul.mubr.msk.bf16.vlgmr.msra.gmra.mrb[0].mxu0 %vm87_vm0, %v62_v4  ;;  %v762_v15 = vld [vmem:[#allocation7 + $0x40] ss:$16 sps:$4 sm:$0xff]   ;;  %v759_v16 = vld [vmem:[#allocation7 + $0x48] ss:$16 sps:$4 sm:$0xff]   ;;  %v763_v17 = vld [vmem:[#allocation7 + $0x64] ss:$16 sps:$4 sm:$0xff]  }
  0x3d   :  { %584 = vmatpush1.bf16.msra.mxu0 %v747_v6  ;;  %v767_v18 = vld [vmem:[#allocation7 + $0x6c] ss:$16 sps:$4 sm:$0xff]   ;;  %v765_v19 = vld [vmem:[#allocation7 + $0x68] ss:$16 sps:$4 sm:$0xff]   ;;  %v768_v20 = vld [vmem:[#allocation7 + $0x60] ss:$16 sps:$4 sm:$0xff]  }
  0x3e   :  { %585 = vmatprep.subr.bf16.mxu0 %v755_v11  ;;  %545 = vmatpush1.bf16.msra.mxu1 %v756_v12  ;;  %v769_v21 = vld [vmem:[#allocation7 + $0x84] ss:$16 sps:$4 sm:$0xff]   ;;  %v773_v22 = vld [vmem:[#allocation7 + $0x8c] ss:$16 sps:$4 sm:$0xff]   ;;  %v774_v23 = vld [vmem:[#allocation7 + $0x80] ss:$16 sps:$4 sm:$0xff]  }
  0x3f   :  { %546 = vmatprep.subr.bf16.mxu1 %v757_v13  ;;  %v771_v24 = vld [vmem:[#allocation7 + $0x88] ss:$16 sps:$4 sm:$0xff]   ;;  %v775_v25 = vld [vmem:[#allocation7 + $0xa4] ss:$16 sps:$4 sm:$0xff]   ;;  %v779_v26 = vld [vmem:[#allocation7 + $0xac] ss:$16 sps:$4 sm:$0xff]  }
  0x40   :  { %v777_v27 = vld [vmem:[#allocation7 + $0xa8] ss:$16 sps:$4 sm:$0xff]   ;;  %v780_v28 = vld [vmem:[#allocation7 + $0xa0] ss:$16 sps:$4 sm:$0xff]   ;;  %v781_v29 = vld [vmem:[#allocation7 + $0xc4] ss:$16 sps:$4 sm:$0xff]  }
  0x41   :  { %586 = vmatpush1.bf16.msra.mxu0 %v753_v10  ;;  %v785_v30 = vld [vmem:[#allocation7 + $0xcc] ss:$16 sps:$4 sm:$0xff]   ;;  %v786_v31 = vld [vmem:[#allocation7 + $0xc0] ss:$16 sps:$4 sm:$0xff]   ;;  %v783_v32 = vld [vmem:[#allocation7 + $0xc8] ss:$16 sps:$4 sm:$0xff]  }
  0x42   :  { %587 = vmatprep.subr.bf16.mxu0 %v761_v14  ;;  %547 = vmatpush1.bf16.msra.mxu1 %v762_v15  ;;  %v787_v33 = vld [vmem:[#allocation7 + $0xe4] ss:$16 sps:$4 sm:$0xff]   ;;  %v791_v34 = vld [vmem:[#allocation7 + $0xec] ss:$16 sps:$4 sm:$0xff]   ;;  %v789_v35 = vld [vmem:[#allocation7 + $0xe8] ss:$16 sps:$4 sm:$0xff]  }
  0x43   :  { %548 = vmatprep.subr.bf16.mxu1 %v763_v17  ;;  %v792_v36 = vld [vmem:[#allocation7 + $0xe0] ss:$16 sps:$4 sm:$0xff]   ;;  %v793_v37 = vld [vmem:[#allocation7 + $0x104] ss:$16 sps:$4 sm:$0xff]   ;;  %v797_v38 = vld [vmem:[#allocation7 + $0x10c] ss:$16 sps:$4 sm:$0xff]  }
  0x44   :  { %v798_v39 = vld [vmem:[#allocation7 + $0x100] ss:$16 sps:$4 sm:$0xff]   ;;  %v795_v40 = vld [vmem:[#allocation7 + $0x108] ss:$16 sps:$4 sm:$0xff]   ;;  %v799_v41 = vld [vmem:[#allocation7 + $0x124] ss:$16 sps:$4 sm:$0xff]  }
  0x45   :  { %588 = vmatpush1.bf16.msra.mxu0 %v759_v16  ;;  %v803_v42 = vld [vmem:[#allocation7 + $0x12c] ss:$16 sps:$4 sm:$0xff]   ;;  %v801_v43 = vld [vmem:[#allocation7 + $0x128] ss:$16 sps:$4 sm:$0xff]   ;;  %v804_v44 = vld [vmem:[#allocation7 + $0x120] ss:$16 sps:$4 sm:$0xff]  }
  0x46   :  { %589 = vmatprep.subr.bf16.mxu0 %v767_v18  ;;  %549 = vmatpush1.bf16.msra.mxu1 %v768_v20  ;;  %v805_v45 = vld [vmem:[#allocation7 + $0x144] ss:$16 sps:$4 sm:$0xff]   ;;  %v809_v46 = vld [vmem:[#allocation7 + $0x14c] ss:$16 sps:$4 sm:$0xff]   ;;  %v810_v47 = vld [vmem:[#allocation7 + $0x140] ss:$16 sps:$4 sm:$0xff]  }
  0x47   :  { %550 = vmatprep.subr.bf16.mxu1 %v769_v21  ;;  %v807_v48 = vld [vmem:[#allocation7 + $0x148] ss:$16 sps:$4 sm:$0xff]   ;;  %v811_v49 = vld [vmem:[#allocation7 + $0x164] ss:$16 sps:$4 sm:$0xff]   ;;  %v815_v50 = vld [vmem:[#allocation7 + $0x16c] ss:$16 sps:$4 sm:$0xff]  }
  0x48   :  { %v816_v51 = vld [vmem:[#allocation7 + $0x160] ss:$16 sps:$4 sm:$0xff]   ;;  %v813_v52 = vld [vmem:[#allocation7 + $0x168] ss:$16 sps:$4 sm:$0xff]   ;;  %v817_v53 = vld [vmem:[#allocation7 + $0x184] ss:$16 sps:$4 sm:$0xff]  }
  0x49   :  { %590 = vmatpush1.bf16.msra.mxu0 %v765_v19  ;;  %v821_v54 = vld [vmem:[#allocation7 + $0x18c] ss:$16 sps:$4 sm:$0xff]   ;;  %v822_v55 = vld [vmem:[#allocation7 + $0x180] ss:$16 sps:$4 sm:$0xff]   ;;  %v819_v56 = vld [vmem:[#allocation7 + $0x188] ss:$16 sps:$4 sm:$0xff]  }
  0x4a   :  { %591 = vmatprep.subr.bf16.mxu0 %v773_v22  ;;  %551 = vmatpush1.bf16.msra.mxu1 %v774_v23  ;;  %v823_v57 = vld [vmem:[#allocation7 + $0x1a4] ss:$16 sps:$4 sm:$0xff]   ;;  %v827_v58 = vld [vmem:[#allocation7 + $0x1ac] ss:$16 sps:$4 sm:$0xff]   ;;  %v828_v59 = vld [vmem:[#allocation7 + $0x1a0] ss:$16 sps:$4 sm:$0xff]  }
  0x4b   :  { %552 = vmatprep.subr.bf16.mxu1 %v775_v25  ;;  %v825_v60 = vld [vmem:[#allocation7 + $0x1a8] ss:$16 sps:$4 sm:$0xff]   ;;  %v829_v61 = vld [vmem:[#allocation7 + $0x1c4] ss:$16 sps:$4 sm:$0xff]   ;;  %v833_v62 = vld [vmem:[#allocation7 + $0x1cc] ss:$16 sps:$4 sm:$0xff]  }
  0x4c   :  { %v831_v63 = vld [vmem:[#allocation7 + $0x1c8] ss:$16 sps:$4 sm:$0xff]   ;;  %v834_v0 = vld [vmem:[#allocation7 + $0x1c0] ss:$16 sps:$4 sm:$0xff]   ;;  %v835_v1 = vld [vmem:[#allocation7 + $0x1e4] ss:$16 sps:$4 sm:$0xff]  }
  0x4d   :  { %592 = vmatpush1.bf16.msra.mxu0 %v771_v24  ;;  %v839_v2 = vld [vmem:[#allocation7 + $0x1ec] ss:$16 sps:$4 sm:$0xff]   ;;  %v837_v3 = vld [vmem:[#allocation7 + $0x1e8] ss:$16 sps:$4 sm:$0xff]   ;;  %v840_v4 = vld [vmem:[#allocation7 + $0x1e0] ss:$16 sps:$4 sm:$0xff]  }
  0x4e   :  { %593 = vmatprep.subr.bf16.mxu0 %v779_v26  ;;  %553 = vmatpush1.bf16.msra.mxu1 %v780_v28  ;;  %v68_v6 = vshrl.u32 %v67_v5, 7  ;;  %v65_v8 = vld [vmem:[%s1030_s2] sm:$0x3] }
  0x4f   :  { %554 = vmatprep.subr.bf16.mxu1 %v781_v29  ;;  %v200_v23 = vld [vmem:[%s1032_s4] sm:$0xf]  ;;  %s943_s4 = smov [#allocation8]  }
  0x50   :  { %v69_v7 = vsub.s32 0, %v68_v6  ;;  %v73_v9 = vsub.s32 1, %v68_v6  ;;  %v212_v22 = vsub.s32 2, %v68_v6  ;;  %v216_v24 = vsub.s32 3, %v68_v6  ;;  %s652_s8 = sshll.u32 %s943_s4, 4  ;;  %s653_s8 = int_to_ptr.vmem [resolvable:$true] %s652_s8 }
  0x51   :  { %594 = vmatpush1.bf16.msra.mxu0 %v777_v27  ;;  %s907_s9 = scalar_lea.vmem %s653_s8, 256  ;;  %p912_p11 = scmp.lt.s32.totalorder %s653_s8, %s653_s8 }
  0x52   :  { %595 = vmatprep.subr.bf16.mxu0 %v785_v30  ;;  %555 = vmatpush1.bf16.msra.mxu1 %v786_v31  ;;  %v70_v10 = vrot.slane %v65_v8, %v69_v7  ;;  %v74_v11 = vrot.slane %v65_v8, %v73_v9  ;;  %v205_v25 = vrot.slane %v200_v23, %v69_v7  ;;  %p908_p10 = scmp.ne.s32.totalorder %s653_s8, %s907_s9  ;;  %p913_p12 = scmp.lt.s32.totalorder %s907_s9, %s907_s9 }
  0x53   :  { %556 = vmatprep.subr.bf16.mxu1 %v787_v33  ;;  %v213_v26 = vrot.slane %v200_v23, %v212_v22  ;;  %v209_v27 = vrot.slane %v200_v23, %v73_v9  ;;  %v217_v28 = vrot.slane %v200_v23, %v216_v24 }
  0x54   :  { %p914_p13 = por %p913_p12, %p912_p11 }
  0x55   :  { %596 = vmatpush1.bf16.msra.mxu0 %v783_v32 }
  0x56   :  { %597 = vmatprep.subr.bf16.mxu0 %v791_v34  ;;  %557 = vmatpush1.bf16.msra.mxu1 %v792_v36  ;;  %p915_p0 = pnand %p914_p13, %p908_p10 }
  0x57   :  { %558 = vmatprep.subr.bf16.mxu1 %v793_v37 }
  0x59   :  { %598 = vmatpush1.bf16.msra.mxu0 %v789_v35 }
  0x5a   :  { %599 = vmatprep.subr.bf16.mxu0 %v797_v38  ;;  %559 = vmatpush1.bf16.msra.mxu1 %v798_v39 }
  0x5b   :  { %560 = vmatprep.subr.bf16.mxu1 %v799_v41 }
  0x5d   :  { %600 = vmatpush1.bf16.msra.mxu0 %v795_v40 }
  0x5e   :  { %601 = vmatprep.subr.bf16.mxu0 %v803_v42  ;;  %561 = vmatpush1.bf16.msra.mxu1 %v804_v44 }
  0x5f   :  { %562 = vmatprep.subr.bf16.mxu1 %v805_v45 }
  0x61   :  { %602 = vmatpush1.bf16.msra.mxu0 %v801_v43 }
  0x62   :  { %603 = vmatprep.subr.bf16.mxu0 %v809_v46  ;;  %563 = vmatpush1.bf16.msra.mxu1 %v810_v47 }
  0x63   :  { %564 = vmatprep.subr.bf16.mxu1 %v811_v49 }
  0x65   :  { %604 = vmatpush1.bf16.msra.mxu0 %v807_v48 }
  0x66   :  { %605 = vmatprep.subr.bf16.mxu0 %v815_v50  ;;  %565 = vmatpush1.bf16.msra.mxu1 %v816_v51 }
  0x67   :  { %566 = vmatprep.subr.bf16.mxu1 %v817_v53 }
  0x69   :  { %606 = vmatpush1.bf16.msra.mxu0 %v813_v52 }
  0x6a   :  { %607 = vmatprep.subr.bf16.mxu0 %v821_v54  ;;  %567 = vmatpush1.bf16.msra.mxu1 %v822_v55 }
  0x6b   :  { %568 = vmatprep.subr.bf16.mxu1 %v823_v57 }
  0x6d   :  { %608 = vmatpush1.bf16.msra.mxu0 %v819_v56 }
  0x6e   :  { %609 = vmatprep.subr.bf16.mxu0 %v827_v58  ;;  %569 = vmatpush1.bf16.msra.mxu1 %v828_v59 }
  0x6f   :  { %570 = vmatprep.subr.bf16.mxu1 %v829_v61 }
  0x71   :  { %610 = vmatpush1.bf16.msra.mxu0 %v825_v60 }
  0x72   :  { %611 = vmatprep.subr.bf16.mxu0 %v833_v62  ;;  %571 = vmatpush1.bf16.msra.mxu1 %v834_v0 }
  0x73   :  { %572 = vmatprep.subr.bf16.mxu1 %v835_v1 }
  0x75   :  { %612 = vmatpush1.bf16.msra.mxu0 %v831_v63 }
  0x76   :  { %613 = vmatprep.subr.bf16.mxu0 %v839_v2  ;;  %573 = vmatpush1.bf16.msra.mxu1 %v840_v4 }
  0x79   :  { %614 = vmatpush1.bf16.msra.mxu0 %v837_v3 }
 0x10f   :  { %v125_v12 = vpop.f32.mrb[0].mxu0 }
 0x110   :  { %v126_v13 = vadd.f32 %v125_v12, %v70_v10  ;;  %v127_v14 = vpop.f32.mrb[1].mxu0 }
 0x111   :  { %v128_v15 = vadd.f32 %v127_v14, %v74_v11  ;;  %v129_v16 = vpop.f32.mrb[2].mxu0 }
 0x112   :  { %v132_v17 = vmax.f32 %v126_v13, 0.0  ;;  %v130_v18 = vpop.f32.mrb[3].mxu0 }
 0x113   :  { %v133_v19 = vmax.f32 %v128_v15, 0.0 }
 0x114   :  { %v134_v21 = vpack.c.bf16 %v132_v17, %v132_v17 }
 0x115   :  { %v135_v20 = vpack.c.bf16 %v133_v19, %v133_v19 }
 0x117   :  { %574 = vmatprep.mubr.bf16.mxu1 %v135_v20  ;;  %615 = vmatprep.mubr.bf16.mxu0 %v135_v20 }
 0x118   :  { %575 = vmatmul.mubr.bf16.vlgmr.msra.gmra.mrb[0].mxu1 %v134_v21  ;;  %616 = vmatmul.mubr.bf16.vlgmr.msra.gmra.mrb[4].mxu0 %v134_v21 }
 0x1eb   :  { %v576_v29 = vpop.f32.mrb[0].mxu1  ;;  %v617_v30 = vpop.f32.mrb[4].mxu0 }
 0x1ec   :  { %v577_v31 = vadd.f32 %v576_v29, %v205_v25  ;;  %v618_v32 = vadd.f32 %v617_v30, %v213_v26  ;;  %v578_v33 = vpop.f32.mrb[1].mxu1  ;;  %v619_v34 = vpop.f32.mrb[5].mxu0 }
 0x1ed   :  { %v579_v35 = vadd.f32 %v578_v33, %v209_v27  ;;  %v620_v36 = vadd.f32 %v619_v34, %v217_v28  ;;  %v580_v37 = vpop.f32.mrb[2].mxu1  ;;  %v621_v38 = vpop.f32.mrb[6].mxu0 }
 0x1ee   :  { %v624_v39 = vmax.f32 %v577_v31, 0.0  ;;  %v626_v40 = vmax.f32 %v618_v32, 0.0  ;;  %v581_v41 = vpop.f32.mrb[3].mxu1  ;;  %v622_v42 = vpop.f32.mrb[7].mxu0 }
 0x1ef   :  { %v625_v43 = vmax.f32 %v579_v35, 0.0  ;;  %v627_v44 = vmax.f32 %v620_v36, 0.0 }
 0x1f1   :  { %v731_v45 = vpack.c.bf16 %v625_v43, %v624_v39  ;;  %v732_v46 = vpack.c.bf16 %v627_v44, %v626_v40 }
 0x1f3   :  { %644 = vst [vmem:[#allocation8] sm:$0xff] %v731_v45  ;;  %645 = vst [vmem:[#allocation8 + $0x8] sm:$0xff] %v732_v46 }
 0x1f4   :  { %918 = shalt.err (!%p915_p0)
}
 0x1f5   :  { %s919_s12 = scalar_lea.hbm %s1033_s5, 256 }
 0x1f6   :  { %p920_p1 = scmp.ne.s32.totalorder %s1033_s5, %s919_s12  ;;  %p923_p2 = scmp.lt.u32.totalorder %s919_s12, %s1033_s5 }
 0x1f8   :  { %p925_p3 = pnand %p923_p2, %p920_p1 }
 0x1fa   :  { %928 = shalt.err (!%p925_p3)
}
 0x1fb   :  { %655 = dma.vmem_to_hbm [thread:$0]  %s653_s8, 256, %s1033_s5, [#allocation4]  }
 0x1fc   :  { %933 = dma.done.wait [#allocation4], 256  }
 0x1fd   :  { %934 = vsyncadd [#allocation4], 4294967040 }
 0x1fe   :  { %659 = vsyncpa [#allocation3], 1 }
 0x1ff   :  { %660 = vsyncpa [#allocation6], 1 }
 0x200   :  { %661 = vsyncpa [#allocation4], 1 }

</bundles_post_ra>
